<compile_context>
chip_gen: v6e
topology: v6e:2x2x1
jax: 0.10.0
libtpu: 0.0.40
codegen_flags: <defaults>
</compile_context>

<pallas_src>
import functools

import jax
import jax.numpy as jnp
from jax import lax
from jax.experimental import pallas as pl
from jax.experimental.pallas import tpu as pltpu


def _spatial_gather_kernel(probs_ref, feats_ref, out_ref, w_ref, *, scale):
    # probs_ref: (K, HW)   same block for every (split, c) step -> DMA'd once per batch
    # feats_ref: (TC, HW)  C-tile of feats in native channel-major layout
    # out_ref:   (TC, K)   context tile, already in the module's (C, K) output order
    # w_ref:     (K, HW)   scratch: normalized softmax weights in feats dtype
    inner_c = pl.program_id(2)

    @pl.when(inner_c == 0)
    def _():
        p = probs_ref[...].astype(jnp.float32)
        if scale != 1.0:                       # static compile-time skip for scale == 1
            p = p * scale
        p = p - jnp.max(p, axis=-1, keepdims=True)
        e = jnp.exp(p)
        # Hoisted reciprocal: computed once per (batch, split), folded into the
        # weights so the per-tile body has no normalization work at all.
        inv = pl.reciprocal(jnp.sum(e, axis=-1, keepdims=True), approx=False)
        w_ref[...] = (e * inv).astype(w_ref.dtype)

    # (TC, HW) . (K, HW)^T -> (TC, K), contracting HW. feats is the LHS (canonical
    # orientation), so only the small weight operand needs an MXU layout change;
    # accumulate in f32 on the MXU.
    ctx = lax.dot_general(
        feats_ref[...], w_ref[...],
        dimension_numbers=(((1,), (1,)), ((), ())),
        preferred_element_type=jnp.float32)
    out_ref[...] = ctx.astype(out_ref.dtype)


def _round_up(x, m):
    return (x + m - 1) // m * m


def _vmem_capacity_bytes(default=64 << 20):
    """Physical VMEM per core; conservative (v7x-sized) fallback if unavailable."""
    try:
        cap = int(pltpu.get_tpu_info().vmem_capacity_bytes)
        if (16 << 20) <= cap <= (512 << 20):
            return cap
    except Exception:
        pass
    return default


def _buffer_bytes(TC, K, HW, probs_isz, feats_isz, out_isz):
    """Explicit VMEM buffers for one kernel instance (double-buffered pipeline)."""
    HW_l = _round_up(HW, 128)          # lane padding
    K_sub = _round_up(K, 8)            # sublane padding of (K, HW) blocks
    K_lane = _round_up(K, 128)         # lane padding of the (TC, K) output block
    return (2 * K_sub * HW_l * probs_isz       # probs input block (double-buffered)
            + K_sub * HW_l * feats_isz         # w scratch (weights, feats dtype)
            + 2 * K_sub * HW_l * 4             # f32 softmax temporaries headroom
            + 2 * TC * HW_l * feats_isz        # feats input tile (double-buffered)
            + 2 * TC * K_lane * out_isz)       # output tile (double-buffered)


def _pick_c_tile(C, K, HW, probs_isz, feats_isz, out_isz, budget_bytes,
                 per_buffer_cap=16 << 20):
    """Largest C tile (multiple of 8, or full C) whose buffers fit the VMEM budget.

    The budget is always enforced -- no full-C fallback for large HW.
    """
    HW_l = _round_up(HW, 128)
    K_lane = _round_up(K, 128)
    fixed = _buffer_bytes(0, K, HW, probs_isz, feats_isz, out_isz)
    per_row = 2 * HW_l * feats_isz + 2 * K_lane * out_isz
    avail = budget_bytes - fixed
    tc_max = min(avail // per_row if per_row > 0 else 0,
                 per_buffer_cap // max(HW_l * feats_isz, 1))
    if tc_max < 8:
        # TODO(synk): add HW tiling (third reduction axis) for extremely large H*W.
        raise ValueError(
            f"spatial_gather: H*W={HW} too large for single-HW-block tiling within "
            f"the VMEM budget ({budget_bytes} bytes).")
    if tc_max >= C:
        return C
    for snap in (256, 128, 8):      # prefer MXU-width-friendly multiples
        if tc_max >= snap:
            return int(tc_max // snap * snap)
    return 8


def spatial_gather(feats, probs, scale=1.0, c_tile=None):
    """JAX/Pallas equivalent of SpatialGather_Module.forward.

    feats: (B, C, H, W), probs: (B, K, H, W)  -> returns (B, C, K, 1)
    """
    B, C, H, W = feats.shape
    Bp, K, Hp, Wp = probs.shape
    assert (B, H, W) == (Bp, Hp, Wp), (feats.shape, probs.shape)
    HW = H * W

    # Contiguous-collapse reshapes only (free views in XLA) -- no HBM transpose.
    probs_r = probs.reshape(B, K, HW)   # (B, K, HW)
    feats_r = feats.reshape(B, C, HW)   # (B, C, HW)

    probs_isz = jnp.dtype(probs.dtype).itemsize
    feats_isz = jnp.dtype(feats.dtype).itemsize
    out_dtype = feats.dtype
    out_isz = jnp.dtype(out_dtype).itemsize

    # VMEM budgeting against the real physical capacity (64 MiB on v7x).
    margin = 4 << 20
    cap_limit = min(_vmem_capacity_bytes() - (8 << 20), 100 << 20)
    budget = cap_limit - margin

    if c_tile is not None:
        TC = int(min(c_tile, C))
        assert TC == C or (TC >= 8 and TC % 8 == 0), "c_tile must be a multiple of 8"
    else:
        TC = _pick_c_tile(C, K, HW, probs_isz, feats_isz, out_isz, budget)

    nC = -(-C // TC)                     # ceil-div; ragged last C block is masked
    # Megacore (v7x): with B == 1 only one parallel unit of work exists on the B
    # axis, so split the C range into two parallel halves (requires an even block
    # count). Softmax is recomputed per half into that half's own scratch.
    nsplit = 2 if (B == 1 and nC >= 2 and nC % 2 == 0) else 1
    nCi = nC // nsplit

    vmem_limit = int(max(32 << 20,
                         min(cap_limit,
                             _buffer_bytes(TC, K, HW, probs_isz, feats_isz, out_isz)
                             + margin)))

    out = pl.pallas_call(
        functools.partial(_spatial_gather_kernel, scale=float(scale)),
        out_shape=jax.ShapeDtypeStruct((B, C, K), out_dtype),
        grid=(B, nsplit, nCi),
        in_specs=[
            # probs: same block for every (split, c) step -> not re-DMA'd across them
            pl.BlockSpec((None, K, HW), lambda b, s, c: (b, 0, 0)),
            # feats: C tile on the sublane axis, full HW on the lane axis
            pl.BlockSpec((None, TC, HW), lambda b, s, c: (b, s * nCi + c, 0)),
        ],
        # output in (C, K) order: matches the module's (B, C, K, 1) result directly
        out_specs=pl.BlockSpec((None, TC, K), lambda b, s, c: (b, s * nCi + c, 0)),
        scratch_shapes=[
            pltpu.VMEM((K, HW), feats.dtype),   # normalized softmax weights
        ],
        compiler_params=pltpu.CompilerParams(
            dimension_semantics=("parallel", "parallel", "arbitrary"),
            vmem_limit_bytes=vmem_limit),
    )(probs_r, feats_r)                          # (B, C, K)

    return out[..., None]                        # (B, C, K, 1)


def _reference(feats, probs, scale=1.0):
    B, C, H, W = feats.shape
    K = probs.shape[1]
    p = probs.reshape(B, K, H * W).astype(jnp.float32)
    f = feats.reshape(B, C, H * W).transpose(0, 2, 1).astype(jnp.float32)
    p = jax.nn.softmax(scale * p, axis=2)
    ctx = jnp.einsum("bks,bsc->bkc", p, f)
    return ctx.transpose(0, 2, 1)[..., None]


if __name__ == "__main__":
    key = jax.random.PRNGKey(0)
    k1, k2, k3, k4, k5, k6 = jax.random.split(key, 6)

    # Case 1: small config matching the module's toy shapes (single C block, B=2).
    B, C, K, H, W = 2, 32, 4, 16, 16
    feats = jax.random.normal(k1, (B, C, H, W), dtype=jnp.float32)
    probs = jax.random.normal(k2, (B, K, H, W), dtype=jnp.float32)
    out = jax.block_until_ready(spatial_gather(feats, probs, scale=1.0))
    ref = _reference(feats, probs, scale=1.0)
    assert out.shape == (B, C, K, 1), out.shape
    assert jnp.allclose(out, ref, atol=1e-4, rtol=1e-4), "case 1 mismatch vs reference"

    # Case 2: forced C tiling (TC=128 -> 2 C blocks) + B==1 parallel C split + scale!=1.
    B2, C2, K2, H2, W2 = 1, 256, 8, 16, 16
    feats2 = jax.random.normal(k3, (B2, C2, H2, W2), dtype=jnp.float32)
    probs2 = jax.random.normal(k4, (B2, K2, H2, W2), dtype=jnp.float32)
    out2 = jax.block_until_ready(spatial_gather(feats2, probs2, scale=2.0, c_tile=128))
    ref2 = _reference(feats2, probs2, scale=2.0)
    assert out2.shape == (B2, C2, K2, 1), out2.shape
    assert jnp.allclose(out2, ref2, atol=1e-4, rtol=1e-4), "case 2 mismatch vs reference"

    # Case 3: bf16 feats (native-dtype MXU path), loose tolerance.
    feats3 = feats2.astype(jnp.bfloat16)
    out3 = jax.block_until_ready(spatial_gather(feats3, probs2, scale=1.0, c_tile=128))
    ref3 = _reference(feats3, probs2, scale=1.0)
    assert jnp.allclose(out3.astype(jnp.float32), ref3, atol=5e-2, rtol=5e-2), \
        "case 3 mismatch vs reference"

    # Case 4: channel count not divisible by the C tile (ragged last block, cdiv grid).
    B4, C4, K4, H4, W4 = 2, 40, 4, 16, 16
    feats4 = jax.random.normal(k5, (B4, C4, H4, W4), dtype=jnp.float32)
    probs4 = jax.random.normal(k6, (B4, K4, H4, W4), dtype=jnp.float32)
    out4 = jax.block_until_ready(spatial_gather(feats4, probs4, scale=1.0, c_tile=16))
    ref4 = _reference(feats4, probs4, scale=1.0)
    assert out4.shape == (B4, C4, K4, 1), out4.shape
    assert jnp.allclose(out4, ref4, atol=1e-4, rtol=1e-4), "case 4 mismatch vs reference"

    print("KERNEL_OK")
</pallas_src>

<mosaic_0001>
module attributes {stable_mosaic.version = 11 : i64} {
  func.func @_spatial_gather_kernel(%arg0: i32, %arg1: i32, %arg2: i32, %arg3: memref<1x4x256xf32, #tpu.memory_space<vmem>>, %arg4: memref<1x32x256xf32, #tpu.memory_space<vmem>>, %arg5: memref<1x32x4xf32, #tpu.memory_space<vmem>>, %arg6: memref<4x256xf32, #tpu.memory_space<vmem>>) attributes {dimension_semantics = [#tpu.dimension_semantics<parallel>, #tpu.dimension_semantics<parallel>, #tpu.dimension_semantics<arbitrary>], iteration_bounds = array<i64: 2, 1, 1>, scalar_prefetch = 0 : i64, scratch_operands = 1 : i64, tpu.core_type = #tpu.core_type<tc>, window_params = [{transform_indices = @transform_0, window_bounds = array<i64: 1, 4, 256>}, {transform_indices = @transform_1, window_bounds = array<i64: 1, 32, 256>}, {transform_indices = @transform_2, window_bounds = array<i64: 1, 32, 4>}]} {
    %c0_i32 = arith.constant 0 : i32
    %0 = arith.cmpi eq, %arg2, %c0_i32 : i32
    %1 = arith.extui %0 : i1 to i32
    %c0_i32_0 = arith.constant 0 : i32
    %2 = arith.cmpi ne, %1, %c0_i32_0 : i32
    scf.if %2 {
      %c0_8 = arith.constant 0 : index
      %c0_9 = arith.constant 0 : index
      %c0_10 = arith.constant 0 : index
      %10 = vector.load %arg3[%c0_8, %c0_9, %c0_10] : memref<1x4x256xf32, #tpu.memory_space<vmem>>, vector<1x4x256xf32>
      %11 = vector.shape_cast %10 : vector<1x4x256xf32> to vector<4x256xf32>
      %cst_11 = arith.constant dense<0xFF800000> : vector<4xf32>
      %12 = vector.multi_reduction <maximumf>, %11, %cst_11 [1] : vector<4x256xf32> to vector<4xf32>
      %13 = vector.shape_cast %12 : vector<4xf32> to vector<4x1xf32>
      %14 = vector.broadcast %13 : vector<4x1xf32> to vector<4x256xf32>
      %15 = arith.subf %11, %14 : vector<4x256xf32>
      %16 = math.exp %15 : vector<4x256xf32>
      %cst_12 = arith.constant dense<0.000000e+00> : vector<4xf32>
      %17 = vector.multi_reduction <add>, %16, %cst_12 [1] : vector<4x256xf32> to vector<4xf32>
      %18 = vector.shape_cast %17 : vector<4xf32> to vector<4x1xf32>
      %19 = tpu.reciprocal %18 : vector<4x1xf32> -> vector<4x1xf32>
      %20 = vector.broadcast %19 : vector<4x1xf32> to vector<4x256xf32>
      %21 = arith.mulf %16, %20 : vector<4x256xf32>
      %c0_13 = arith.constant 0 : index
      %c0_14 = arith.constant 0 : index
      %22 = vector.load %arg6[%c0_13, %c0_14] : memref<4x256xf32, #tpu.memory_space<vmem>>, vector<4x256xf32>
      tpu.vector_store %arg6[%c0_13, %c0_14], %21 {strides = array<i32>} : memref<4x256xf32, #tpu.memory_space<vmem>>, vector<4x256xf32>,
    } else {
    }
    %c0 = arith.constant 0 : index
    %c0_1 = arith.constant 0 : index
    %c0_2 = arith.constant 0 : index
    %3 = vector.load %arg4[%c0, %c0_1, %c0_2] : memref<1x32x256xf32, #tpu.memory_space<vmem>>, vector<1x32x256xf32>
    %4 = vector.shape_cast %3 : vector<1x32x256xf32> to vector<32x256xf32>
    %c0_3 = arith.constant 0 : index
    %c0_4 = arith.constant 0 : index
    %5 = vector.load %arg6[%c0_3, %c0_4] : memref<4x256xf32, #tpu.memory_space<vmem>>, vector<4x256xf32>
    %cst = arith.constant dense<0.000000e+00> : vector<32x4xf32>
    %6 = tpu.matmul %4, %5, %cst {dimension_numbers = #tpu.dot_dimension_numbers<[1], [1], [0], [0], [0, 0, 1, 0], [], []>} : vector<32x256xf32>, vector<4x256xf32>, vector<32x4xf32> -> vector<32x4xf32>
    %c0_5 = arith.constant 0 : index
    %c0_6 = arith.constant 0 : index
    %c0_7 = arith.constant 0 : index
    %7 = vector.load %arg5[%c0_5, %c0_6, %c0_7] : memref<1x32x4xf32, #tpu.memory_space<vmem>>, vector<1x32x4xf32>
    %8 = vector.shape_cast %7 : vector<1x32x4xf32> to vector<32x4xf32>
    %9 = vector.shape_cast %6 : vector<32x4xf32> to vector<1x32x4xf32>
    tpu.vector_store %arg5[%c0_5, %c0_6, %c0_7], %9 {strides = array<i32>} : memref<1x32x4xf32, #tpu.memory_space<vmem>>, vector<1x32x4xf32>,
    return
  }
  func.func @transform_0(%arg0: i32, %arg1: i32, %arg2: i32) -> (i32, i32, i32) {
    %c0_i32 = arith.constant 0 : i32
    %c0_i32_0 = arith.constant 0 : i32
    %c0_i32_1 = arith.constant 0 : i32
    return %arg0, %c0_i32, %c0_i32_0 : i32, i32, i32
  }
  func.func @transform_1(%arg0: i32, %arg1: i32, %arg2: i32) -> (i32, i32, i32) {
    %c1_i32 = arith.constant 1 : i32
    %0 = arith.muli %arg1, %c1_i32 : i32
    %1 = arith.addi %0, %arg2 : i32
    %c0_i32 = arith.constant 0 : i32
    %c0_i32_0 = arith.constant 0 : i32
    return %arg0, %1, %c0_i32 : i32, i32, i32
  }
  func.func @transform_2(%arg0: i32, %arg1: i32, %arg2: i32) -> (i32, i32, i32) {
    %c1_i32 = arith.constant 1 : i32
    %0 = arith.muli %arg1, %c1_i32 : i32
    %1 = arith.addi %0, %arg2 : i32
    %c0_i32 = arith.constant 0 : i32
    %c0_i32_0 = arith.constant 0 : i32
    return %arg0, %1, %c0_i32 : i32, i32, i32
  }
}

</mosaic_0001>

<bundles_post_ra>
// kernel: tpu_custom_call.1
= control target key start
LH: loop header
LB: loop body
LE: loop exit
PB: predicated region body
PF: predicated region fallthrough
CT: control target
= control target key end

     0   :  { %7 = vsyncpa [#allocation4], 0  ;;  %s884_s0 = inlined_call_operand.hbm [shape: f32[2,4,256], index: 0, kind: input, shape index: {}]   ;;  %s885_s1 = inlined_call_operand.hbm [shape: f32[2,32,256], index: 1, kind: input, shape index: {}]   ;;  %s886_s2 = inlined_call_operand.vmem [shape: f32[2,32,4], index: 2, kind: output, shape index: {}]  }
   0x1   :  { %9 = vsyncpa [#allocation4 + $0x1], 0 }
   0x2   :  { %10 = vsyncpa [#allocation6], 0 }
   0x3   :  { %12 = vsyncpa [#allocation6 + $0x1], 0  ;;  %s742_s9 = smov 0   ;;  %s744_s10 = smov 0  }
   0x4   :  { %s746_s11 = smov 0   ;;  %s748_s12 = smov 0  }
   0x5   :  { %s750_s13 = smov 0   ;;  %s752_s14 = smov 0  }
   0x6 LB: > { %s520_s15 = sadd.s32 4294967295, %s720_s14   ;;  %s37_s16 = sadd.s32 1, %s716_s13  ;;  %s720_s14 = sphi %s752_s14, %s18_s14   ;;  %s716_s13 = sphi %s750_s13, %s895_s13   ;;  %s712_s12 = sphi %s748_s12, %s894_s12   ;;  %s708_s11 = sphi %s746_s11, %s893_s11   ;;  %s704_s10 = sphi %s744_s10, %s892_s10   ;;  %s700_s9 = sphi %s742_s9, %s891_s9  }
   0x7   : > { %p39_p0 = scmp.ge.s32.totalorder %s37_s16, 2  ;;  %s44_s17 = sadd.s32 1, %s708_s11 }
   0x8   : > { %p51_p1 = scmp.ne.s32.totalorder %s708_s11, %s704_s10  ;;  %p52_p2 = scmp.eq.s32.totalorder %s720_s14, 0 }
   0x9   : > { %s897_s16 = smov (%p39_p0, %s37_s16), 0  ;;  %p57_p4 = scmp.ne.s32.totalorder %s704_s10, %s700_s9 }
   0xa   : > { %p778_p3 = por %p52_p2, %p51_p1  ;;  %s41_s19 = ssub.s32 %s716_s13, %s897_s16 }
   0xb   : > { %p58_p5 = scmp.eq.s32.totalorder %s520_s15, 0  ;;  %p42_p6 = scmp.eq.s32.totalorder %s41_s19, 0 }
   0xc   : > { %p553_p8 = scmp.lt.s32.totalorder %s720_s14, 2  ;;  %s794_s22 = sand.u32 1, %s708_s11  }
   0xd   : > { %p785_p7 = por %p58_p5, %p57_p4  ;;  %s537_s23 = sshll.u32 %s716_s13, 7 }
   0xe   : > { %s791_s21 = scalar_select %p42_p6, %s708_s11, %s44_s17  }
   0xf   : > { %s524_s24 = sshll.u32 %s794_s22, 3  ;;  %s151_s27 = scalar_lea.hbm %s884_s0, %s537_s23 }
  0x10   : > { %s145_s28 = scalar_lea.vmem [#allocation3], %s524_s24  ;;  %p803_p9 = pnand %p553_p8, %p778_p3 }
  0x11   : > { %s153_s29 = sshll.u32 %s145_s28, 4  ;;  %p530_p10 = scmp.ge.s32.totalorder %s720_s14, 1  ;;  %s154_s29 = int_to_ptr.vmem [resolvable:$true] %s153_s29 }
  0x12   : > { %p183_p11 = scmp.lt.s32.totalorder %s720_s14, 3  ;;  %s142_s3 = scalar_lea.sflag [#allocation4], %s794_s22 }
  0x13   : > { %p612_p12 = pneg %p803_p9  ;;  %s623_s4 = scalar_lea.vmem %s154_s29, 128 }
  0x14   : > { %p624_p13 = scmp.ne.s32.totalorder %s154_s29, %s623_s4  ;;  %s722_s5 = smov [#allocation3]  }
  0x15   : > { %s628_s6 = sshll.u32 %s722_s5, 4  ;;  %s629_s6 = int_to_ptr.vmem [resolvable:$false] %s628_s6 }
  0x16   : > { %p626_p0 = pnand %p624_p13, %p612_p12  ;;  %s630_s7 = scalar_lea.vmem %s629_s6, 256 }
  0x17   : > { %p631_p2 = scmp.lt.s32.totalorder %s154_s29, %s629_s6  ;;  %p632_p3 = scmp.lt.s32.totalorder %s630_s7, %s623_s4 }
  0x18   : > { %p627_p1 = pneg %p626_p0 }
  0x19   : > { %p633_p4 = por %p632_p3, %p631_p2 }
  0x1b   : > { %p634_p5 = pnand %p633_p4, %p627_p1 }
  0x1d   : > { %637 = shalt.err (!%p634_p5)
}
  0x1e   : > { %549 = dma.hbm_to_vmem [thread:$0]  (!%p803_p9), %s151_s27, 128, %s154_s29, %s142_s3  }
  0x1f   : > { %p821_p6 = pnand %p530_p10, %p183_p11  ;;  %s527_s9 = sshll.u32 %s794_s22, 6 }
  0x20   : > { %s538_s15 = sshll.u32 %s716_s13, 10  ;;  %s164_s23 = scalar_lea.vmem [#allocation5], %s527_s9 }
  0x21   : > { %s174_s19 = scalar_lea.hbm %s885_s1, %s538_s15  ;;  %s175_s24 = sshll.u32 %s164_s23, 4  ;;  %s176_s24 = int_to_ptr.vmem [resolvable:$true] %s175_s24 }
  0x22   : > { %s161_s25 = scalar_lea.sflag [#allocation6], %s794_s22  ;;  %s651_s26 = scalar_lea.vmem %s176_s24, 1024 }
  0x23   : > { %p652_p8 = scmp.ne.s32.totalorder %s176_s24, %s651_s26  ;;  %s723_s27 = smov [#allocation5]  }
  0x24   : > { %s656_s28 = sshll.u32 %s723_s27, 4  ;;  %s657_s28 = int_to_ptr.vmem [resolvable:$false] %s656_s28 }
  0x25   : > { %p654_p13 = pnand %p652_p8, %p612_p12  ;;  %s658_s29 = scalar_lea.vmem %s657_s28, 2048 }
  0x26   : > { %p659_p10 = scmp.lt.s32.totalorder %s176_s24, %s657_s28  ;;  %p660_p11 = scmp.lt.s32.totalorder %s658_s29, %s651_s26 }
  0x27   : > { %p655_p0 = pneg %p654_p13 }
  0x28   : > { %p661_p1 = por %p660_p11, %p659_p10 }
  0x2a   : > { %p662_p2 = pnand %p661_p1, %p655_p0 }
  0x2c   : > { %665 = shalt.err (!%p662_p2)
}
  0x2d   : > { %s724_s3 = smov 256   ;;  %s725_s4 = smov 16  }
  0x2e   : > { %552 = dma.hbm_to_vmem [thread:$0]  (!%p803_p9), %s174_s19, 1024, %s176_s24, %s161_s25, %s724_s3, %s724_s3, %s725_s4  }
  0x2f   : > { %187 = sbr.rel (%p821_p6) target bundleno = 586 (0x24a), region = 28  ;;  %s189_s22 = sand.u32 (!%p821_p6), 1, %s704_s10  }
  0x30   : > { %s531_s5 = sshll.u32 (!%p821_p6), %s189_s22, 3  ;;  %s190_s6 = scalar_lea.sflag (!%p821_p6), [#allocation4], %s189_s22 }
  0x31   : > { %s193_s7 = scalar_lea.vmem (!%p821_p6), [#allocation3], %s531_s5 }
  0x34   : > { %691 = dma.done.wait (%p785_p7), %s190_s6, 128  }
  0x35   : > { %693 = vsyncadd (%p785_p7), %s190_s6, 4294967168  ;;  %s532_s9 = sshll.u32 %s189_s22, 6  ;;  %s199_s15 = scalar_lea.sflag [#allocation6], %s189_s22 }
  0x36   : > { %s843_s17 = scalar_lea.vmem [#allocation5], %s532_s9 }
  0x37   : > { %695 = dma.done.wait (%p785_p7), %s199_s15, 1024  }
  0x38   : > { %697 = vsyncadd (%p785_p7), %s199_s15, 4294966272  ;;  %vm255_vm0 = vcmask 1043456   ;;  %v251_v0 = vld [vmem:[%s193_s7] sm:$0xff]  ;;  %v726_v5 = vmov 839922192   ;;  %v265_v7 = vlaneseq  ;;  %v294_v20 = vld [vmem:[%s843_s17 + $0x8] sm:$0xff] }
  0x39   : > { %v253_v1 = vcombine.high %v251_v0, %v251_v0  ;;  %v256_v2 = vsel %vm255_vm0, %v251_v0, -inf  ;;  %v263_v6 = vunpack.c.l.s4 %v726_v5  ;;  %v298_v21 = vld [vmem:[%s843_s17 + $0x28] sm:$0xff]  ;;  %369 = vmatprep.mubr.f32.mxu0 %v294_v20  ;;  %v293_v27 = vld [vmem:[%s843_s17] sm:$0xff]  ;;  %v296_v29 = vld [vmem:[%s843_s17 + $0x18] sm:$0xff]  ;;  %p237_p7 = scmp.lt.s32.totalorder %s712_s12, 1  ;;  %vm390_vm1 = vcmask 31744  }
  0x3a   : > { %v266_v9 = vshrl.u32 %v265_v7, 7  ;;  %379 = vmatprep.mubr.f32.mxu1 %v298_v21  ;;  %v297_v28 = vld [vmem:[%s843_s17 + $0x20] sm:$0xff]  ;;  %v300_v30 = vld [vmem:[%s843_s17 + $0x38] sm:$0xff]  ;;  %v295_v31 = vld [vmem:[%s843_s17 + $0x10] sm:$0xff] }
  0x3b   : > { %v257_v3 = vsel %vm255_vm0, %v253_v1, -inf  ;;  %v264_v8 = vunpack.c.0.s8 %v263_v6  ;;  %v299_v32 = vld [vmem:[%s843_s17 + $0x30] sm:$0xff]  ;;  %s899_s12 = smov (!%p237_p7, %s712_s12), 1 }
  0x3c   : > { %v258_v4 = vmax.f32 %v256_v2, %v257_v3  ;;  %s539_s20 = sshll.u32 %s899_s12, 5 }
  0x3d   : > { %v267_v10 = vsub.s32 %v264_v8, %v266_v9  ;;  %s244_s18 = scalar_lea.vmem %s886_s2, %s539_s20 }
  0x3e   : > { %259 = vmax.xlane.f32.xlu0 %v258_v4 }
  0xc7   : > { %v260_v11 = vpop.xlane.xlu0 %259 }
  0xc8   : > { %v268_v12 = vrot.slane %v260_v11, %v267_v10 }
  0xca   : > { %v270_v13 = vsub.f32 %v251_v0, %v268_v12 }
  0xcc   : > { %v271_v14 = vmul.f32 1.442695, %v270_v13 }
  0xce   : > { %606 = vpow2.f32 %v271_v14 }
  0xdb   : > { %v607_v15 = vpop.eup %606 }
  0xdc   : > { %v274_v16 = vcombine.high %v607_v15, %v607_v15  ;;  %v276_v17 = vsel %vm255_vm0, %v607_v15, 0.0 }
  0xde   : > { %v277_v18 = vsel %vm255_vm0, %v274_v16, 0.0 }
  0xdf   : > { %v278_v19 = vadd.f32 %v277_v18, %v276_v17 }
  0xe1   : > { %279 = vadd.xlane.f32.xlu0 %v278_v19 }
 0x16a   : > { %v280_v22 = vpop.xlane.xlu0 %279 }
 0x16b   : > { %608 = vrcp.f32 %v280_v22 }
 0x178   : > { %v609_v23 = vpop.eup %608 }
 0x179   : > { %v289_v24 = vrot.slane %v609_v23, %v267_v10 }
 0x17b   : > { %v291_v25 = vmul.f32 %v607_v15, %v289_v24 }
 0x17d   : > { %v303_v26 = vcombine.high %v291_v25, %v291_v25 }
 0x17f   : > { %335 = vmatprep.subr.mxu0 %v303_v26  ;;  %540 = vmatprep.subr.mxu1 %v303_v26 }
 0x180   : > { %336 = vmatpush1.xpose.msra.mxu0 %v291_v25  ;;  %541 = vmatpush1.xpose.msra.mxu1 %v291_v25 }
 0x183   : > { %370 = vmatmul.mubr.f32.vlgmr.msra.gmra.mxu0 %v293_v27  ;;  %380 = vmatmul.mubr.f32.vlgmr.msra.gmra.mxu1 %v297_v28 }
 0x184   : > { %374 = vmatprep.mubr.f32.mxu0 %v296_v29  ;;  %384 = vmatprep.mubr.f32.mxu1 %v300_v30 }
 0x187   : > { %375 = vmatmul.mubr.f32.gmra.mxu0 %v295_v31  ;;  %385 = vmatmul.mubr.f32.gmra.mxu1 %v299_v32 }
 0x243   : > { %v371_v33 = vpop.f32.mrf.mxu0  ;;  %v381_v34 = vpop.f32.mrf.mxu1 }
 0x244   : > { %391 = vst.msk [vmem:[%s244_s18] sm:$0xff] %vm390_vm1, %v371_v33  ;;  %393 = vst.msk [vmem:[%s244_s18 + $0x10] sm:$0xff] %vm390_vm1, %v381_v34 }
 0x245   : > { %v373_v35 = vpop.f32.mrf.mxu0  ;;  %v383_v36 = vpop.f32.mrf.mxu1 }
 0x247   : > { %v376_v37 = vpop.f32.mrf.mxu0  ;;  %v386_v38 = vpop.f32.mrf.mxu1 }
 0x248   : > { %392 = vst.msk [vmem:[%s244_s18 + $0x8] sm:$0xff] %vm390_vm1, %v376_v37  ;;  %394 = vst.msk [vmem:[%s244_s18 + $0x18] sm:$0xff] %vm390_vm1, %v386_v38 }
 0x249   : > { %v378_v39 = vpop.f32.mrf.mxu0  ;;  %v388_v40 = vpop.f32.mrf.mxu1 }
 0x24a PF: > { %s18_s14 = sadd.s32 1, %s720_s14   ;;  %s891_s9 = smov %s704_s10 }
 0x24b   : > { %p15_p9 = scmp.ge.s32.totalorder %s18_s14, 4   ;;  %s892_s10 = smov %s708_s11 }
 0x24c   : > { %s893_s11 = smov %s791_s21  ;;  %s894_s12 = smov %s716_s13 }
 0x24d   : > { %s895_s13 = smov %s897_s16  ;;  %17 = sbr.rel (!%p15_p9) target bundleno = 6 (0x6), region = 85 }
 0x252   :  { %428 = vsyncpa [#allocation4], 1 }
 0x253   :  { %430 = vsyncpa [#allocation4 + $0x1], 1 }
 0x254   :  { %431 = vsyncpa [#allocation6], 1 }
 0x255   :  { %433 = vsyncpa [#allocation6 + $0x1], 1 }

</bundles_post_ra>
